<compile_context>
chip_gen: v7x
topology: tpu7x:2x2x1
jax: 0.10.0
libtpu: 0.0.40
codegen_flags: <defaults>
</compile_context>

<pallas_src>
import numpy as np
import jax
import jax.numpy as jnp
from jax.experimental import pallas as pl
from jax.experimental.pallas import tpu as pltpu


def _round_up(a, m):
    return ((a + m - 1) // m) * m


def _pick_row_tile(M, max_tile=256):
    """Row tile (multiple of 16 = bf16 sublane pack) minimizing padded rows;
    prefers >=2 grid steps (v7x has 2 TensorCores) and larger tiles on ties."""
    best_tm, best_key = 16, None
    for tm in (t for t in (256, 128, 64, 32, 16) if t <= max_tile):
        m_pad = _round_up(M, tm)
        key = (m_pad - M, 0 if m_pad // tm >= 2 else 1, -tm)
        if best_key is None or key < best_key:
            best_key, best_tm = key, tm
    return best_tm


# ----------------------------------------------------------------------------
# Pallas kernel: (tm, K) x (K, tn) tile matmul, f32 accumulation + f32 bias.
# ----------------------------------------------------------------------------
def _matmul_bias_kernel(x_ref, w_ref, b_ref, o_ref):
    acc = jnp.dot(x_ref[...], w_ref[...], preferred_element_type=jnp.float32)
    o_ref[...] = (acc + b_ref[...]).astype(o_ref.dtype)


def pallas_matmul_bias(x, w, b, *, col_tile=512):
    """out = x @ w + b.
    x: (M, K) bf16, w: (K, N) bf16 with N a multiple of 128 (pre-padded at init),
    b: (1, N) f32.  Returns (M, N) f32."""
    M, K = x.shape
    Kw, N = w.shape
    assert K == Kw and N % 128 == 0 and b.shape == (1, N)

    tm = _pick_row_tile(M)
    M_pad = _round_up(M, tm)
    x_p = x if M_pad == M else jnp.pad(x, ((0, M_pad - M), (0, 0)))

    tn = 128
    for t in (col_tile, 256, 128):
        if t <= N and N % t == 0:
            tn = t
            break
    # Guarantee >=2 grid steps when possible so both v7x TensorCores get work.
    if M_pad // tm == 1 and N // tn == 1 and N % 256 == 0:
        tn = N // 2

    grid = (M_pad // tm, N // tn)

    # K (= F*9) stays un-tiled: fits VMEM comfortably for realistic F (<=512).
    # For much larger K add a K grid axis ("arbitrary") with a f32 VMEM
    # accumulator and pl.when init/finalize.
    blk_bytes = 2 * (tm * K * 2 + K * tn * 2 + tm * tn * 4 + tn * 4)
    vmem_limit = int(min(64 * 1024 * 1024, max(32 * 1024 * 1024, 2 * blk_bytes)))

    flops = 2 * M_pad * K * N
    bytes_accessed = 2 * (M_pad * K + K * N) + 4 * (N + M_pad * N)

    out_p = pl.pallas_call(
        _matmul_bias_kernel,
        out_shape=jax.ShapeDtypeStruct((M_pad, N), jnp.float32),
        grid_spec=pl.GridSpec(
            grid=grid,
            in_specs=[
                pl.BlockSpec((tm, K), lambda i, j: (i, 0)),
                pl.BlockSpec((K, tn), lambda i, j: (0, j)),
                pl.BlockSpec((1, tn), lambda i, j: (0, j)),
            ],
            out_specs=pl.BlockSpec((tm, tn), lambda i, j: (i, j)),
        ),
        compiler_params=pltpu.CompilerParams(
            dimension_semantics=("parallel", "parallel"),
            vmem_limit_bytes=vmem_limit,
        ),
        cost_estimate=pl.CostEstimate(
            flops=flops, transcendentals=0, bytes_accessed=bytes_accessed
        ),
    )(x_p, w, b)

    return out_p[:M]


# ----------------------------------------------------------------------------
# IcosahedronConv2d forward: init-time table/weight prep + jitted forward.
# ----------------------------------------------------------------------------
def make_icosahedron_conv2d(mat_neighbors_np, conv_w, conv_b, nbr_features):
    """Returns jitted forward(x: (B, V, F) f32) -> (B, V, F_out) f32."""
    V = mat_neighbors_np.shape[0]
    F = int(nbr_features)
    conv_w = np.asarray(conv_w, dtype=np.float32)
    conv_b = np.asarray(conv_b, dtype=np.float32)
    F_out = conv_w.shape[0]
    assert conv_w.shape == (F_out, F, 3, 3)

    # --- gather table: trace the module's exact permute/mm/view/permute/view
    #     pipeline on 1-based flat source indices (0 marks always-zero columns
    #     of mat_neighbors, i.e. missing neighbors).
    src = np.arange(1, V * F + 1, dtype=np.float64).reshape(V, F)   # x[0,cam,feat] -> cam*F+feat+1
    xp = np.transpose(src, (1, 0)).reshape(F, V)                    # permute(0,2,1).view(B*F,V), B=1
    mm = xp @ mat_neighbors_np.astype(np.float64)                   # (F, 9V): each column one-hot or zero
    t = mm.reshape(1, V, F, 3, 3).transpose(0, 2, 1, 3, 4).reshape(V, F * 9)
    gmask_np = (t > 0.5).astype(np.float32)
    gidx_np = np.where(t > 0.5, t - 1.0, 0.0).astype(np.int32)      # (V, F*9) flat idx into x[b].reshape(V*F)

    # --- conv weights: Conv2d on a 3x3 patch == matmul over F*9.
    #     Pre-transpose, pre-pad to lane-dense N, pre-cast to bf16 (init-time).
    N_pad = _round_up(F_out, 128)
    w_flat = conv_w.reshape(F_out, F * 9).T                          # (F*9, F_out)
    w_pad = np.zeros((F * 9, N_pad), dtype=np.float32)
    w_pad[:, :F_out] = w_flat
    b_pad = np.zeros((1, N_pad), dtype=np.float32)
    b_pad[0, :F_out] = conv_b

    gidx = jnp.asarray(gidx_np.reshape(-1))                          # (V*F*9,) int32
    gmask = jnp.asarray(gmask_np, dtype=jnp.bfloat16)                # (V, F*9)
    w_dev = jnp.asarray(w_pad, dtype=jnp.bfloat16)
    b_dev = jnp.asarray(b_pad, dtype=jnp.float32)

    @jax.jit
    def forward(x):
        B, Vx, Fx = x.shape
        assert Vx == V and Fx == F
        # 9-way neighbor gather; all view/permute scrambles folded into gidx,
        # so the patch matrix comes out directly in (B*V, F*9) layout.
        xf = x.astype(jnp.bfloat16).reshape(B, V * F)
        patches = jnp.take(xf, gidx, axis=1).reshape(B, V, F * 9) * gmask[None]
        patches = patches.reshape(B * V, F * 9)
        out = pallas_matmul_bias(patches, w_dev, b_dev)              # (B*V, N_pad) f32
        # .view(batch_size, nbr_cam, nbr_features): module assumes F_out == F.
        return out[:, :F_out].reshape(B, V, F_out)

    return forward


# ----------------------------------------------------------------------------
# Host-side preprocessing (mirrors the module's __init__, NumPy instead of torch).
# ----------------------------------------------------------------------------
def build_icosahedron():
    phi = (1.0 + 5.0 ** 0.5) / 2.0
    verts = np.array(
        [
            [-1.0, phi, 0.0], [1.0, phi, 0.0], [-1.0, -phi, 0.0], [1.0, -phi, 0.0],
            [0.0, -1.0, phi], [0.0, 1.0, phi], [0.0, -1.0, -phi], [0.0, 1.0, -phi],
            [phi, 0.0, -1.0], [phi, 0.0, 1.0], [-phi, 0.0, -1.0], [-phi, 0.0, 1.0],
        ],
        dtype=np.float64,
    )
    verts /= np.linalg.norm(verts, axis=1, keepdims=True)
    faces = [
        (0, 11, 5), (0, 5, 1), (0, 1, 7), (0, 7, 10), (0, 10, 11),
        (1, 5, 9), (5, 11, 4), (11, 10, 2), (10, 7, 6), (7, 1, 8),
        (3, 9, 4), (3, 4, 2), (3, 2, 6), (3, 6, 8), (3, 8, 9),
        (4, 9, 5), (2, 4, 11), (6, 2, 10), (8, 6, 7), (9, 8, 1),
    ]
    edges = set()
    for a, b, c in faces:
        for u, v in ((a, b), (b, c), (c, a)):
            edges.add((min(u, v), max(u, v)))
    return verts, sorted(edges)


def get_neighbors(list_edges, nbr_vert):
    neighbors = [[] for _ in range(nbr_vert)]
    for v1, v2 in list_edges:
        neighbors[v1].append(v2)
        neighbors[v2].append(v1)
    return neighbors


def sort_neighbors(neighbors, nbr_vert):
    new_neighbors = [[] for _ in range(nbr_vert)]
    for i in range(nbr_vert):
        remaining = neighbors[i].copy()
        vert = remaining[0]
        new_neighbors[i].append(vert)
        remaining.remove(vert)
        while len(remaining) != 0:
            common = [c for c in remaining if c in neighbors[vert]]
            vert = common[0]
            new_neighbors[i].append(vert)
            remaining.remove(vert)
    return new_neighbors


def sort_rotation(verts, list_neighbors, nbr_vert):
    new_neighbors = [[] for _ in range(nbr_vert)]
    for i in range(nbr_vert):
        p0 = verts[i]
        p1 = verts[list_neighbors[i][0]]
        p2 = verts[list_neighbors[i][1]]
        v1 = p1 - p0
        v2 = p2 - p1
        vn = np.cross(v1, v2)
        n = vn / np.linalg.norm(vn)
        milieu = p1 + v2 / 2.0
        v3 = milieu - p0
        cg = p0 + 2.0 * v3 / 3.0
        # NOTE: `> 1.0` mirrors the original torch module verbatim (likely meant `> 0`).
        if float(np.dot(n, cg)) > 1.0:
            new_neighbors[i] = list_neighbors[i]
        else:
            list_neighbors[i].reverse()
            new_neighbors[i] = list_neighbors[i]
    return new_neighbors


def get_mat_neighbors(list_neighbors, nbr_vert):
    mat = np.zeros((nbr_vert, nbr_vert * 9), dtype=np.float32)
    for index_cam in range(nbr_vert):
        mat[index_cam, index_cam * 9] = 1.0
        for j, nb in enumerate(list_neighbors[index_cam]):
            mat[nb, index_cam * 9 + j + 1] = 1.0
    return mat


if __name__ == "__main__":
    # Small shapes consistent with the module: base icosahedron (12 cams), 32 features.
    B, F = 2, 32
    verts, list_edges = build_icosahedron()
    V = int(np.max(np.asarray(list_edges)) + 1)  # 12

    neighbors = get_neighbors(list_edges, V)
    neighbors = sort_neighbors(neighbors, V)
    neighbors = sort_rotation(verts, neighbors, V)
    mat_neighbors_np = get_mat_neighbors(neighbors, V)           # (V, 9V)

    key = jax.random.PRNGKey(0)
    kx, kw, kb = jax.random.split(key, 3)
    x = jax.random.normal(kx, (B, V, F), dtype=jnp.float32)
    # module = Conv2d(F, F, kernel_size=3): synthetic deterministic parameters.
    conv_w = jax.random.normal(kw, (F, F, 3, 3), dtype=jnp.float32) * 0.05
    conv_b = jax.random.normal(kb, (F,), dtype=jnp.float32) * 0.05

    forward = make_icosahedron_conv2d(
        mat_neighbors_np, np.asarray(conv_w), np.asarray(conv_b), F
    )
    out = jax.block_until_ready(forward(x))

    # Pure-JAX f32 reference of the module's exact op sequence
    # (permute -> dense mm with mat_neighbors -> view/permute/view -> conv matmul).
    mat_neighbors = jnp.asarray(mat_neighbors_np)
    xp = jnp.transpose(x, (0, 2, 1)).reshape(B * F, V)
    ref = (xp @ mat_neighbors).reshape(B, V, F, 3, 3)
    ref = ref.transpose(0, 2, 1, 3, 4).reshape(B * V, F * 9)
    ref = ref @ conv_w.reshape(F, F * 9).T + conv_b
    ref = ref.reshape(B, V, F)

    assert out.shape == (B, V, F)
    # bf16 MXU inputs with f32 accumulation over K=F*9=288 terms -> ~1e-2 abs error.
    assert jnp.allclose(out, ref, atol=5e-2, rtol=5e-2), float(
        jnp.max(jnp.abs(out - ref))
    )

    print("KERNEL_OK")
</pallas_src>

<mosaic_0001>
module attributes {stable_mosaic.version = 11 : i64} {
  func.func @_matmul_bias_kernel(%arg0: i32, %arg1: i32, %arg2: memref<16x288xbf16, #tpu.memory_space<vmem>>, %arg3: memref<288x128xbf16, #tpu.memory_space<vmem>>, %arg4: memref<1x128xf32, #tpu.memory_space<vmem>>, %arg5: memref<16x128xf32, #tpu.memory_space<vmem>>) attributes {dimension_semantics = [#tpu.dimension_semantics<parallel>, #tpu.dimension_semantics<parallel>], iteration_bounds = array<i64: 2, 1>, scalar_prefetch = 0 : i64, scratch_operands = 0 : i64, tpu.core_type = #tpu.core_type<tc>, window_params = [{transform_indices = @transform_0, window_bounds = array<i64: 16, 288>}, {transform_indices = @transform_1, window_bounds = array<i64: 288, 128>}, {transform_indices = @transform_2, window_bounds = array<i64: 1, 128>}, {transform_indices = @transform_3, window_bounds = array<i64: 16, 128>}]} {
    %c0 = arith.constant 0 : index
    %c0_0 = arith.constant 0 : index
    %0 = vector.load %arg2[%c0, %c0_0] : memref<16x288xbf16, #tpu.memory_space<vmem>>, vector<16x288xbf16>
    %c0_1 = arith.constant 0 : index
    %c0_2 = arith.constant 0 : index
    %1 = vector.load %arg3[%c0_1, %c0_2] : memref<288x128xbf16, #tpu.memory_space<vmem>>, vector<288x128xbf16>
    %cst = arith.constant dense<0.000000e+00> : vector<16x128xf32>
    %2 = tpu.matmul %0, %1, %cst {dimension_numbers = #tpu.dot_dimension_numbers<[1], [0], [0], [1], [0, 0, 1, 1], [], []>} : vector<16x288xbf16>, vector<288x128xbf16>, vector<16x128xf32> -> vector<16x128xf32>
    %c0_3 = arith.constant 0 : index
    %c0_4 = arith.constant 0 : index
    %3 = vector.load %arg4[%c0_3, %c0_4] : memref<1x128xf32, #tpu.memory_space<vmem>>, vector<1x128xf32>
    %4 = vector.broadcast %3 : vector<1x128xf32> to vector<16x128xf32>
    %5 = arith.addf %2, %4 : vector<16x128xf32>
    %c0_5 = arith.constant 0 : index
    %c0_6 = arith.constant 0 : index
    %6 = vector.load %arg5[%c0_5, %c0_6] : memref<16x128xf32, #tpu.memory_space<vmem>>, vector<16x128xf32>
    tpu.vector_store %arg5[%c0_5, %c0_6], %5 {strides = array<i32>} : memref<16x128xf32, #tpu.memory_space<vmem>>, vector<16x128xf32>,
    return
  }
  func.func @transform_0(%arg0: i32, %arg1: i32) -> (i32, i32) {
    %c0_i32 = arith.constant 0 : i32
    %c0_i32_0 = arith.constant 0 : i32
    return %arg0, %c0_i32 : i32, i32
  }
  func.func @transform_1(%arg0: i32, %arg1: i32) -> (i32, i32) {
    %c0_i32 = arith.constant 0 : i32
    %c0_i32_0 = arith.constant 0 : i32
    return %c0_i32, %arg1 : i32, i32
  }
  func.func @transform_2(%arg0: i32, %arg1: i32) -> (i32, i32) {
    %c0_i32 = arith.constant 0 : i32
    %c0_i32_0 = arith.constant 0 : i32
    return %c0_i32, %arg1 : i32, i32
  }
  func.func @transform_3(%arg0: i32, %arg1: i32) -> (i32, i32) {
    %c0_i32 = arith.constant 0 : i32
    return %arg0, %arg1 : i32, i32
  }
}

</mosaic_0001>

<bundles_post_ra>
// kernel: mul.0
= control target key start
LH: loop header
LB: loop body
LE: loop exit
PB: predicated region body
PF: predicated region fallthrough
CT: control target
= control target key end

     0   :  { %v170_v39 = vmov 0.0   ;;  %s234_s0 = inlined_call_operand.vmem [shape: bf16[24,288], index: 0, kind: input, shape index: {}]   ;;  %s235_s1 = inlined_call_operand.vmem [shape: bf16[24,288], index: 1, kind: input, shape index: {}]   ;;  %s236_s2 = inlined_call_operand.vmem [shape: bf16[24,288], index: 2, kind: output, shape index: {}]  }
   0x1   :  { %v3_v0 = vld [vmem:[%s234_s0] sm:$0xff]   ;;  %v144_v2 = vld [vmem:[%s234_s0 + $0xc] sm:$0xff]   ;;  %v146_v7 = vld [vmem:[%s234_s0 + $0x18] sm:$0xff]  }
   0x2   :  { %v6_v1 = vld [vmem:[%s235_s1] sm:$0xff]   ;;  %v4_v3 = vunpack.c.l.bf16 %v3_v0  ;;  %v15_v5 = vunpack.c.l.bf16 %v144_v2  ;;  %v145_v6 = vld [vmem:[%s235_s1 + $0xc] sm:$0xff]   ;;  %v147_v8 = vld [vmem:[%s235_s1 + $0x18] sm:$0xff]   ;;  %v41_v9 = vunpack.c.h.bf16 %v3_v0  ;;  %v28_v11 = vunpack.c.l.bf16 %v146_v7 }
   0x3   :  { %v7_v4 = vunpack.c.l.bf16 %v6_v1  ;;  %v19_v10 = vunpack.c.l.bf16 %v145_v6  ;;  %v32_v12 = vunpack.c.l.bf16 %v147_v8  ;;  %v45_v13 = vunpack.c.h.bf16 %v6_v1  ;;  %v160_v14 = vld [vmem:[%s234_s0 + $0x8] ss:$12 sps:$4 sm:$0xff]   ;;  %v166_v20 = vld [vmem:[%s234_s0 + $0x20] sm:$0xf] }
   0x4   :  { %v161_v15 = vld [vmem:[%s235_s1 + $0x8] ss:$12 sps:$4 sm:$0xff]   ;;  %v59_v17 = vunpack.c.h.bf16 %v144_v2  ;;  %v63_v18 = vunpack.c.h.bf16 %v145_v6  ;;  %v77_v19 = vunpack.c.h.bf16 %v146_v7  ;;  %v81_v24 = vunpack.c.h.bf16 %v147_v8  ;;  %v167_v25 = vld [vmem:[%s235_s1 + $0x20] sm:$0xf] }
   0x5   :  { %v11_v16 = vmul.f32 %v7_v4, %v4_v3  ;;  %v23_v21 = vmul.f32 %v19_v10, %v15_v5  ;;  %v36_v22 = vmul.f32 %v32_v12, %v28_v11  ;;  %v49_v23 = vmul.f32 %v45_v13, %v41_v9 }
   0x6   :  { %v67_v26 = vmul.f32 %v63_v18, %v59_v17  ;;  %v95_v27 = vunpack.c.l.bf16 %v160_v14  ;;  %v99_v28 = vunpack.c.l.bf16 %v161_v15  ;;  %v110_v29 = vunpack.c.h.bf16 %v160_v14 }
   0x7   :  { %v55_v30 = vpack.c.bf16 %v49_v23, %v11_v16  ;;  %v85_v31 = vmul.f32 %v81_v24, %v77_v19  ;;  %v114_v32 = vunpack.c.h.bf16 %v161_v15  ;;  %v125_v33 = vunpack.c.l.bf16 %v166_v20 }
   0x8   :  { %v73_v34 = vpack.c.bf16 %v67_v26, %v23_v21  ;;  %v103_v35 = vmul.f32 %v99_v28, %v95_v27  ;;  %v129_v36 = vunpack.c.l.bf16 %v167_v25 }
   0x9   :  { %151 = vst [vmem:[%s236_s2] sm:$0xff] %v55_v30  ;;  %v91_v37 = vpack.c.bf16 %v85_v31, %v36_v22  ;;  %v118_v38 = vmul.f32 %v114_v32, %v110_v29 }
   0xa   :  { %155 = vst [vmem:[%s236_s2 + $0xc] sm:$0xff] %v73_v34  ;;  %v106_v40 = vpack.c.bf16 %v170_v39, %v103_v35  ;;  %v133_v41 = vmul.f32 %v129_v36, %v125_v33 }
   0xb   :  { %159 = vst [vmem:[%s236_s2 + $0x18] sm:$0xff] %v91_v37  ;;  %v121_v42 = vpack.c.bf16 %v170_v39, %v118_v38 }
   0xc   :  { %162 = vst [vmem:[%s236_s2 + $0x8] sm:$0xf] %v106_v40  ;;  %v136_v43 = vpack.c.bf16 %v170_v39, %v133_v41 }
   0xd   :  { %165 = vst [vmem:[%s236_s2 + $0x14] sm:$0xf] %v121_v42 }
   0xe   :  { %168 = vst [vmem:[%s236_s2 + $0x20] sm:$0xf] %v136_v43 }

// kernel: forward.1
= control target key start
LH: loop header
LB: loop body
LE: loop exit
PB: predicated region body
PF: predicated region fallthrough
CT: control target
= control target key end

     0   :  { %s753_s12 = smov 0   ;;  %s755_s13 = smov 0   ;;  %s847_s0 = inlined_call_operand.vmem [shape: bf16[32,288], index: 0, kind: input, shape index: {}]   ;;  %s848_s1 = inlined_call_operand.vmem [shape: bf16[288,128], index: 1, kind: input, shape index: {}]   ;;  %s849_s2 = inlined_call_operand.vmem [shape: f32[1,128], index: 2, kind: input, shape index: {}]   ;;  %s850_s3 = inlined_call_operand.vmem [shape: f32[32,128], index: 3, kind: output, shape index: {}]  }
   0x1   :  { %s757_s14 = smov 0  }
   0x2 LB: > { %s25_s15 = sadd.s32 1, %s725_s13  ;;  %p595_p0 = scmp.ge.s32.totalorder %s729_s14, 1  ;;  %s729_s14 = sphi %s757_s14, %s13_s14   ;;  %s725_s13 = sphi %s755_s13, %s852_s13   ;;  %s721_s12 = sphi %s753_s12, %s851_s12  }
   0x3   : > { %p27_p1 = scmp.ge.s32.totalorder %s25_s15, 2  ;;  %p170_p2 = scmp.lt.s32.totalorder %s729_s14, 3 }
   0x5   : > { %s854_s15 = smov (%p27_p1, %s25_s15), 0  ;;  %p171_p3 = pnand %p595_p0, %p170_p2 }
   0x6   : > { %v685_v0 = vld [vmem:[%s848_s1 + $0x40] sm:$0xff] (!%p171_p3)   ;;  %v731_v2 = vmov (!%p171_p3), 0.0   ;;  %s596_s20 = sshll.u32 (!%p171_p3), %s721_s12, 1  ;;  %v687_v3 = vld [vmem:[%s848_s1 + $0x48] sm:$0xff] (!%p171_p3)   ;;  %v689_v5 = vld [vmem:[%s848_s1 + $0x50] sm:$0xff] (!%p171_p3)   ;;  %vm732_vm0 = vmmov (!%p171_p3), 0  }
   0x7   : > { %174 = sbr.rel (%p171_p3) target bundleno = 261 (0x105), region = 32  ;;  %v686_v1 = vld [vmem:[%s848_s1] sm:$0xff] (!%p171_p3)   ;;  %650 = vmatprep.subr.bf16.mxu1 (!%p171_p3), %v731_v2  ;;  %625 = vmatprep.subr.bf16.mxu0 (!%p171_p3), %v685_v0  ;;  %p206_p4 = scmp.lt.s32.totalorder (!%p171_p3), %s596_s20, 3  ;;  %v688_v4 = vld [vmem:[%s848_s1 + $0x8] sm:$0xff] (!%p171_p3)   ;;  %v690_v6 = vld [vmem:[%s848_s1 + $0x10] sm:$0xff] (!%p171_p3)   ;;  %vm399_vm1 = vcmask (!%p171_p3), 261120  }
   0x8   : > { %626 = vmatpush3.bf16.msra.mxu0 (!%p171_p3), %v686_v1  ;;  %654 = vmatprep.mubr.msk.bf16.mxu1 (!%p171_p3), %vm732_vm0, %v731_v2  ;;  %v691_v7 = vld [vmem:[%s848_s1 + $0x58] sm:$0xff] (!%p171_p3)   ;;  %v693_v9 = vld [vmem:[%s848_s1 + $0x60] sm:$0xff] (!%p171_p3)   ;;  %v695_v12 = vld [vmem:[%s848_s1 + $0x68] sm:$0xff] (!%p171_p3)  }
   0x9   : > { %627 = vmatprep.subr.bf16.mxu0 (!%p171_p3), %v687_v3  ;;  %v692_v8 = vld [vmem:[%s848_s1 + $0x18] sm:$0xff] (!%p171_p3)   ;;  %v699_v10 = vld [vmem:[%s848_s1 + $0x80] sm:$0xff] (!%p171_p3)   ;;  %v696_v13 = vld [vmem:[%s848_s1 + $0x28] sm:$0xff] (!%p171_p3)  }
   0xa   : > { %v694_v11 = vld [vmem:[%s848_s1 + $0x20] sm:$0xff] (!%p171_p3)   ;;  %651 = vmatpush3.bf16.msra.mxu1 (!%p171_p3), %v699_v10  ;;  %v705_v15 = vld [vmem:[%s848_s1 + $0x88] sm:$0xff] (!%p171_p3)   ;;  %v697_v16 = vld [vmem:[%s848_s1 + $0x70] sm:$0xff] (!%p171_p3)  }
   0xb   : > { %652 = vmatprep.subr.bf16.mxu1 (!%p171_p3), %v731_v2  ;;  %v698_v18 = vld [vmem:[%s848_s1 + $0x30] sm:$0xff] (!%p171_p3)   ;;  %v700_v19 = vld [vmem:[%s848_s1 + $0x78] sm:$0xff] (!%p171_p3)   ;;  %v600_v28 = vld [vmem:[%s849_s2] ss:$0 sm:$0xff] (!%p171_p3) }
   0xc   : > { %628 = vmatpush3.bf16.msra.mxu0 (!%p171_p3), %v688_v4  ;;  %v701_v20 = vld [vmem:[%s848_s1 + $0x38] sm:$0xff] (!%p171_p3)  }
   0xd   : > { %629 = vmatprep.subr.bf16.mxu0 (!%p171_p3), %v689_v5 }
   0xe   : > { %s856_s20 = smov (!%p206_p4, %s596_s20), 3  ;;  %653 = vmatpush3.bf16.msra.mxu1 %v705_v15 }
   0xf   : > { %s658_s6 = smul.u32 12, %s856_s20  ;;  %s599_s9 = sshll.u32 %s856_s20, 3 }
  0x10   : > { %630 = vmatpush3.bf16.msra.mxu0 %v690_v6  ;;  %s226_s12 = scalar_lea.vmem %s850_s3, %s599_s9 }
  0x11   : > { %631 = vmatprep.subr.bf16.mxu0 %v691_v7  ;;  %s210_s18 = scalar_lea.vmem %s847_s0, %s658_s6 }
  0x12   : > { %v704_v14 = vld [vmem:[%s210_s18 + $0x4] ss:$12 sps:$4 sm:$0xff]   ;;  %v706_v17 = vld [vmem:[%s210_s18 + $0x8] ss:$12 sps:$4 sm:$0xff]   ;;  %v702_v21 = vld [vmem:[%s210_s18] ss:$12 sps:$4 sm:$0xff]  }
  0x13   : > { %435 = vmatprep.mubr.bf16.mxu0 %v704_v14  ;;  %655 = vmatmul.mubr.msk.bf16.vlgmr.msra.gmra.mrb[0].mxu1 %vm399_vm1, %v706_v17 }
  0x14   : > { %632 = vmatpush3.bf16.msra.mxu0 %v692_v8 }
  0x15   : > { %633 = vmatprep.subr.bf16.mxu0 %v693_v9 }
  0x18   : > { %634 = vmatpush3.bf16.msra.mxu0 %v694_v11 }
  0x19   : > { %635 = vmatprep.subr.bf16.mxu0 %v695_v12 }
  0x1c   : > { %636 = vmatpush3.bf16.msra.mxu0 %v696_v13 }
  0x1d   : > { %637 = vmatprep.subr.bf16.mxu0 %v697_v16 }
  0x20   : > { %638 = vmatpush3.bf16.msra.mxu0 %v698_v18 }
  0x21   : > { %639 = vmatprep.subr.bf16.mxu0 %v700_v19 }
  0x24   : > { %640 = vmatpush3.bf16.msra.mxu0 %v701_v20 }
  0x27   : > { %436 = vmatmul.mubr.bf16.vlgmr.msra.gmra.mrb[0].mxu0 %v702_v21 }
  0xe6   : > { %v478_v22 = vpop.f32.mrb[0].mxu1 }
  0xe7   : > { %v656_v23 = vpop.f32.mrb[1].mxu1 }
  0xe8   : > { %v481_v24 = vpop.f32.mrb[2].mxu1 }
  0xe9   : > { %v657_v25 = vpop.f32.mrb[3].mxu1 }
  0xfa   : > { %v641_v26 = vpop.f32.mrb[0].mxu0 }
  0xfb   : > { %v642_v27 = vpop.f32.mrb[1].mxu0 }
  0xfc   : > { %v643_v29 = vadd.f32 %v642_v27, %v641_v26  ;;  %v644_v30 = vpop.f32.mrb[2].mxu0 }
  0xfd   : > { %v645_v31 = vpop.f32.mrb[3].mxu0 }
  0xfe   : > { %v438_v32 = vadd.f32 %v643_v29, %v600_v28  ;;  %v646_v33 = vadd.f32 %v645_v31, %v644_v30 }
 0x100   : > { %v479_v34 = vadd.f32 %v478_v22, %v438_v32  ;;  %v441_v35 = vadd.f32 %v646_v33, %v600_v28 }
 0x102   : > { %485 = vst [vmem:[%s226_s12] sm:$0xff] %v479_v34  ;;  %v482_v36 = vadd.f32 %v481_v24, %v441_v35 }
 0x104   : > { %486 = vst [vmem:[%s226_s12 + $0x8] sm:$0xff] %v482_v36 }
 0x105 PF: > { %s13_s14 = sadd.s32 1, %s729_s14   ;;  %s851_s12 = smov %s725_s13 }
 0x106   : > { %p10_p5 = scmp.ge.s32.totalorder %s13_s14, 4   ;;  %s852_s13 = smov %s854_s15 }
 0x108   :  { %12 = sbr.rel (!%p10_p5) target bundleno = 2 (0x2), region = 68 }

</bundles_post_ra>
